<compile_context>
chip_gen: v5e
topology: v5e:2x2
jax: 0.10.0
libtpu: 0.0.40
codegen_flags: <defaults>
</compile_context>

<pallas_src>
import numpy as np
import jax
import jax.numpy as jnp
from jax.experimental import pallas as pl
from jax.experimental.pallas import tpu as pltpu


# ----------------------------------------------------------------------------
# Kernel: two MXU calls + element-wise epilogue, no serial recurrence.
# ----------------------------------------------------------------------------
def goru_cell_kernel(xh_ref, h_ref, W_ref, M_ref, gb_ref, b_ref, out_ref):
    N = h_ref.shape[1]
    h = h_ref[...]                                            # (bb, N) f32

    # Single deep-contraction gate/U matmul: [x|h] @ [[gUr|gUz|U],[gWr|gWz|0]].
    # bf16 operands, f32 accumulation on the MXU.
    g = jnp.dot(xh_ref[...].astype(W_ref.dtype), W_ref[...],
                preferred_element_type=jnp.float32)           # (bb, 3N)

    # No sigmoid on r / z -- matches the PyTorch module verbatim.
    r = g[:, :N] + gb_ref[:, :N]
    z = g[:, N:2 * N] + gb_ref[:, N:]
    Ux = g[:, 2 * N:]

    # EUNN recurrence folded into one resident f32 operator: unitary = h @ M.
    # (Single f32 matmul; no per-step serial chain.)
    unitary = jnp.dot(h, M_ref[...], preferred_element_type=jnp.float32)

    # modReLU + GRU-style mix.
    newh = Ux + unitary * r
    t = jnp.maximum(jnp.abs(newh) + b_ref[...], 0.0)
    # sign(newh) * relu(|newh| + bias), with sign(0) == 0 (matches torch.sign).
    newh = jnp.where(newh > 0, t, 0.0) - jnp.where(newh < 0, t, 0.0)
    out_ref[...] = h * z + (1.0 - z) * newh


# ----------------------------------------------------------------------------
# Wrapper
# ----------------------------------------------------------------------------
def goru_cell_forward(params, input_, hx, *, block_batch=None):
    B, In = input_.shape
    _, N = hx.shape
    W, M = params['W'], params['M']
    gb, b = params['gate_bias'], params['bias']

    # Single deeper-contraction LHS [x | h] (layout plumbing, done once in XLA;
    # avoids an in-kernel minor-dim concat at a non-128-aligned offset).
    xh = jnp.concatenate([input_, hx], axis=1)                # (B, In+N) f32

    # ---- batch tiling (review #4 / #7) -------------------------------------
    if block_batch is None:
        if B <= 256:
            block_batch = B                                   # grid=(1,), no tiling
        else:
            nb0 = pl.cdiv(B, 256)
            nb0 = nb0 + (nb0 % 2)                             # even tile count -> both v7x TCs busy
            block_batch = ((pl.cdiv(B, nb0) + 15) // 16) * 16 # mult. of 16 (bf16 sublane packing)
    block_batch = min(block_batch, B)
    nb = pl.cdiv(B, block_batch)
    # Padded rows in a partial last tile may contain garbage (no sigmoid on the
    # gates), but they are dropped on store -- benign for valid rows.

    # ---- VMEM budget from actual per-tile buffers (review #5 / #6) ----------
    tile_bytes = block_batch * ((In + N) + N + N) * 4         # xh + h + out tiles
    weight_bytes = sum(int(a.size) * a.dtype.itemsize for a in (W, M, gb, b))
    # 2x double-buffered activation tiles, 2x resident weights (the pipeliner
    # still allocates two buffers for constant-index inputs), +25% headroom.
    need = int((2 * tile_bytes + 2 * weight_bytes) * 1.25) + (1 << 20)
    try:
        phys = int(getattr(pltpu.get_tpu_info(), 'vmem_capacity_bytes',
                           128 * 1024 * 1024))
    except Exception:  # pragma: no cover - conservative fallback
        phys = 128 * 1024 * 1024
    if phys <= 64 * 1024 * 1024:        # v7x-class: leave compiler headroom
        cap = 48 * 1024 * 1024
    else:                               # v5e / v6e: allow well beyond 64 MiB
        cap = 104 * 1024 * 1024
    vmem_limit = int(min(max(need, 32 * 1024 * 1024), cap))

    # ---- cost estimate kept in sync (review #10) ----------------------------
    flops = int(2 * B * (In + N) * 3 * N      # fused gate/U matmul
                + 2 * B * N * N               # EUNN operator matmul
                + 12 * B * N)                 # element-wise epilogue
    bytes_accessed = int((B * (In + N) + 2 * B * N) * 4 + weight_bytes)

    # Resident weights: constant index_map -> never re-DMA'd across tiles.
    # (At large N, add pipeline_mode=pl.Buffered(1) to these specs to drop the
    #  second pipeline buffer; negligible at N=128.)
    in_specs = [
        pl.BlockSpec((block_batch, In + N), lambda i: (i, 0)),   # [x|h]: batch-tiled
        pl.BlockSpec((block_batch, N), lambda i: (i, 0)),        # h: batch-tiled
        pl.BlockSpec(W.shape, lambda i: (0, 0)),                 # fused bf16 weights
        pl.BlockSpec(M.shape, lambda i: (0, 0)),                 # EUNN operator (f32)
        pl.BlockSpec(gb.shape, lambda i: (0, 0)),                # gate bias (1, 2N)
        pl.BlockSpec(b.shape, lambda i: (0, 0)),                 # modReLU bias (1, N)
    ]
    out_specs = pl.BlockSpec((block_batch, N), lambda i: (i, 0))

    return pl.pallas_call(
        goru_cell_kernel,
        out_shape=jax.ShapeDtypeStruct((B, N), jnp.float32),
        grid=(nb,),
        in_specs=in_specs,
        out_specs=out_specs,
        compiler_params=pltpu.CompilerParams(
            dimension_semantics=("parallel",),
            vmem_limit_bytes=vmem_limit),
        cost_estimate=pl.CostEstimate(flops=flops, transcendentals=0,
                                      bytes_accessed=bytes_accessed),
    )(xh, hx, W, M, gb, b)


# ----------------------------------------------------------------------------
# Parameter preparation (mirrors GORUCell.reset_parameters + forward-derived
# constants).  The EUNN operator M is built by running the EXACT torch step
# semantics (including the stack(axis=1) de-interleave quirk) on the identity.
# ----------------------------------------------------------------------------
def _eunn_operator(diagA, offA, diagB, offB, N):
    """Return M (f32, N x N) such that eunn(h) == h @ M, built by applying the
    torch _EUNN loop verbatim to the rows of the identity matrix."""
    x = jnp.eye(N, dtype=jnp.float32)
    for i in range(diagA.shape[0]):
        # A-stage: adjacent pair swap.
        y = x.reshape(N, N // 2, 2)
        y = jnp.stack([y[:, :, 1], y[:, :, 0]], axis=2).reshape(N, N)
        x = x * diagA[i] + y * offA[i]
        # B-stage: de-interleave of the interior (torch stack(axis=1) quirk).
        x_top, x_mid, x_bot = x[:, :1], x[:, 1:-1], x[:, -1:]
        y = x_mid.reshape(N, N // 2 - 1, 2)
        y = jnp.stack([y[:, :, 1], y[:, :, 0]], axis=1).reshape(N, N - 2)
        y = jnp.concatenate([x_top, y, x_bot], axis=1)
        x = x * diagB[i] + y * offB[i]
    return x


def init_goru_params(key, input_size, hidden_size, capacity,
                     weight_dtype=jnp.bfloat16):
    N, L = hidden_size, capacity
    k1, k2, k3, k4 = jax.random.split(key, 4)
    thetaA = jax.random.uniform(k1, (N // 2, L // 2), jnp.float32, -0.1, 0.1)
    thetaB = jax.random.uniform(k2, (N // 2 - 1, L // 2), jnp.float32, -0.1, 0.1)
    U = jax.random.uniform(k3, (input_size, N), jnp.float32, -0.1, 0.1)
    gate_U = jax.nn.initializers.orthogonal()(k4, (input_size, 2 * N), jnp.float32)
    gate_W = jnp.tile(jnp.eye(N, dtype=jnp.float32), (1, 2))           # [I | I]
    bias = jnp.zeros((1, N), jnp.float32)
    gate_bias = jnp.zeros((1, 2 * N), jnp.float32)

    # EUNN rotation coefficients exactly as the torch forward derives them
    # (including the .view(L//2, N) flat reinterpretation).
    sinA, cosA = jnp.sin(thetaA), jnp.cos(thetaA)
    sinB, cosB = jnp.sin(thetaB), jnp.cos(thetaB)
    diagA = jnp.stack([cosA, cosA], axis=2).reshape(L // 2, N)
    offA = jnp.stack([-sinA, sinA], axis=2).reshape(L // 2, N)
    diagB = jnp.stack([cosB, cosB], axis=2).reshape(L // 2, N - 2)
    offB = jnp.stack([-sinB, sinB], axis=2).reshape(L // 2, N - 2)
    ones = jnp.ones((L // 2, 1), jnp.float32)
    zeros = jnp.zeros((L // 2, 1), jnp.float32)
    diagB = jnp.concatenate([ones, diagB, ones], axis=1)
    offB = jnp.concatenate([zeros, offB, zeros], axis=1)

    # Fold the fixed linear EUNN recurrence into one f32 operator (kept in f32
    # so the kernel matches a step-by-step f32 reference to ~1e-6).
    M = _eunn_operator(diagA, offA, diagB, offB, N)

    # Fused bf16 gate/U weights: W_cat = [[gUr|gUz|U],[gWr|gWz|0]], (In+N, 3N).
    Wx = jnp.concatenate([gate_U, U], axis=1)                                  # (In, 3N)
    Wh = jnp.concatenate([gate_W, jnp.zeros((N, N), jnp.float32)], axis=1)     # (N, 3N)
    W = jnp.concatenate([Wx, Wh], axis=0).astype(weight_dtype)                 # (In+N, 3N)

    return {'W': W, 'M': M, 'gate_bias': gate_bias, 'bias': bias,
            'diagA': diagA, 'offA': offA, 'diagB': diagB, 'offB': offB}


# ----------------------------------------------------------------------------
# Pure-JAX reference: line-by-line translation of the PyTorch forward with the
# step-by-step EUNN loop (uses the same bf16-rounded gate/U weights).
# ----------------------------------------------------------------------------
def goru_forward_ref(params, input_, hx):
    B, N = hx.shape
    In = input_.shape[1]
    W = params['W']
    gate_Ux = jnp.dot(input_.astype(W.dtype), W[:In, :2 * N],
                      preferred_element_type=jnp.float32)
    gate_Wh = jnp.dot(hx.astype(W.dtype), W[In:, :2 * N],
                      preferred_element_type=jnp.float32) + params['gate_bias']
    gates = gate_Ux + gate_Wh
    r, z = gates[:, :N], gates[:, N:]
    Ux = jnp.dot(input_.astype(W.dtype), W[:In, 2 * N:],
                 preferred_element_type=jnp.float32)
    x = hx
    for i in range(params['diagA'].shape[0]):
        y = x.reshape(B, N // 2, 2)
        y = jnp.stack([y[:, :, 1], y[:, :, 0]], axis=2).reshape(B, N)
        x = x * params['diagA'][i] + y * params['offA'][i]
        x_top, x_mid, x_bot = x[:, :1], x[:, 1:-1], x[:, -1:]
        y = x_mid.reshape(B, N // 2 - 1, 2)
        y = jnp.stack([y[:, :, 1], y[:, :, 0]], axis=1).reshape(B, N - 2)
        y = jnp.concatenate([x_top, y, x_bot], axis=1)
        x = x * params['diagB'][i] + y * params['offB'][i]
    newh = Ux + x * r
    newh = jnp.sign(newh) * jax.nn.relu(jnp.abs(newh) + params['bias'][0])
    return hx * z + (1.0 - z) * newh


if __name__ == "__main__":
    # Small, lane-friendly shapes (hidden a multiple of 128, batch <= 256 so
    # the kernel runs as a single untiled grid step per the review).
    batch, input_size, hidden_size, capacity = 16, 32, 128, 4

    key = jax.random.PRNGKey(0)
    kp, kx, kh = jax.random.split(key, 3)
    params = init_goru_params(kp, input_size, hidden_size, capacity)
    input_ = jax.random.normal(kx, (batch, input_size), jnp.float32)
    hx = jax.random.normal(kh, (batch, hidden_size), jnp.float32)

    out = goru_cell_forward(params, input_, hx)
    out = jax.block_until_ready(out)

    ref = goru_forward_ref(params, input_, hx)
    np.testing.assert_allclose(np.asarray(out), np.asarray(ref),
                               rtol=1e-3, atol=1e-3)
    print("KERNEL_OK")
</pallas_src>

<mosaic_0001>
module attributes {stable_mosaic.version = 11 : i64} {
  func.func @goru_cell_kernel(%arg0: i32, %arg1: memref<16x160xf32, #tpu.memory_space<vmem>>, %arg2: memref<16x128xf32, #tpu.memory_space<vmem>>, %arg3: memref<160x384xbf16, #tpu.memory_space<vmem>>, %arg4: memref<128x128xf32, #tpu.memory_space<vmem>>, %arg5: memref<1x256xf32, #tpu.memory_space<vmem>>, %arg6: memref<1x128xf32, #tpu.memory_space<vmem>>, %arg7: memref<16x128xf32, #tpu.memory_space<vmem>>) attributes {dimension_semantics = [#tpu.dimension_semantics<parallel>], iteration_bounds = array<i64: 1>, scalar_prefetch = 0 : i64, scratch_operands = 0 : i64, tpu.core_type = #tpu.core_type<tc>, window_params = [{transform_indices = @transform_0, window_bounds = array<i64: 16, 160>}, {transform_indices = @transform_1, window_bounds = array<i64: 16, 128>}, {pipeline_mode = #tpu.pipeline_mode<synchronous>, transform_indices = @transform_2, window_bounds = array<i64: 160, 384>}, {pipeline_mode = #tpu.pipeline_mode<synchronous>, transform_indices = @transform_3, window_bounds = array<i64: 128, 128>}, {pipeline_mode = #tpu.pipeline_mode<synchronous>, transform_indices = @transform_4, window_bounds = array<i64: 1, 256>}, {pipeline_mode = #tpu.pipeline_mode<synchronous>, transform_indices = @transform_5, window_bounds = array<i64: 1, 128>}, {transform_indices = @transform_6, window_bounds = array<i64: 16, 128>}]} {
    %c0 = arith.constant 0 : index
    %c0_0 = arith.constant 0 : index
    %0 = vector.load %arg2[%c0, %c0_0] : memref<16x128xf32, #tpu.memory_space<vmem>>, vector<16x128xf32>
    %c0_1 = arith.constant 0 : index
    %c0_2 = arith.constant 0 : index
    %1 = vector.load %arg1[%c0_1, %c0_2] : memref<16x160xf32, #tpu.memory_space<vmem>>, vector<16x160xf32>
    %2 = arith.truncf %1 : vector<16x160xf32> to vector<16x160xbf16>
    %c0_3 = arith.constant 0 : index
    %c0_4 = arith.constant 0 : index
    %3 = vector.load %arg3[%c0_3, %c0_4] : memref<160x384xbf16, #tpu.memory_space<vmem>>, vector<160x384xbf16>
    %cst = arith.constant dense<0.000000e+00> : vector<16x384xf32>
    %4 = tpu.matmul %2, %3, %cst {dimension_numbers = #tpu.dot_dimension_numbers<[1], [0], [0], [1], [0, 0, 1, 1], [], []>} : vector<16x160xbf16>, vector<160x384xbf16>, vector<16x384xf32> -> vector<16x384xf32>
    %5 = vector.extract_strided_slice %4 {offsets = [0, 0], sizes = [16, 128], strides = [1, 1]} : vector<16x384xf32> to vector<16x128xf32>
    %c0_5 = arith.constant 0 : index
    %c0_6 = arith.constant 0 : index
    %6 = vector.load %arg5[%c0_5, %c0_6] : memref<1x256xf32, #tpu.memory_space<vmem>>, vector<1x128xf32>
    %7 = vector.broadcast %6 : vector<1x128xf32> to vector<16x128xf32>
    %8 = arith.addf %5, %7 : vector<16x128xf32>
    %9 = vector.extract_strided_slice %4 {offsets = [0, 128], sizes = [16, 128], strides = [1, 1]} : vector<16x384xf32> to vector<16x128xf32>
    %c0_7 = arith.constant 0 : index
    %c128 = arith.constant 128 : index
    %10 = vector.load %arg5[%c0_7, %c128] : memref<1x256xf32, #tpu.memory_space<vmem>>, vector<1x128xf32>
    %11 = vector.broadcast %10 : vector<1x128xf32> to vector<16x128xf32>
    %12 = arith.addf %9, %11 : vector<16x128xf32>
    %13 = vector.extract_strided_slice %4 {offsets = [0, 256], sizes = [16, 128], strides = [1, 1]} : vector<16x384xf32> to vector<16x128xf32>
    %c0_8 = arith.constant 0 : index
    %c0_9 = arith.constant 0 : index
    %14 = vector.load %arg4[%c0_8, %c0_9] : memref<128x128xf32, #tpu.memory_space<vmem>>, vector<128x128xf32>
    %cst_10 = arith.constant dense<0.000000e+00> : vector<16x128xf32>
    %15 = tpu.matmul %0, %14, %cst_10 {dimension_numbers = #tpu.dot_dimension_numbers<[1], [0], [0], [1], [0, 0, 1, 1], [], []>} : vector<16x128xf32>, vector<128x128xf32>, vector<16x128xf32> -> vector<16x128xf32>
    %16 = arith.mulf %15, %8 : vector<16x128xf32>
    %17 = arith.addf %13, %16 : vector<16x128xf32>
    %18 = math.absf %17 : vector<16x128xf32>
    %c0_11 = arith.constant 0 : index
    %c0_12 = arith.constant 0 : index
    %19 = vector.load %arg6[%c0_11, %c0_12] : memref<1x128xf32, #tpu.memory_space<vmem>>, vector<1x128xf32>
    %20 = vector.broadcast %19 : vector<1x128xf32> to vector<16x128xf32>
    %21 = arith.addf %18, %20 : vector<16x128xf32>
    %cst_13 = arith.constant 0.000000e+00 : f32
    %22 = vector.broadcast %cst_13 : f32 to vector<16x128xf32>
    %23 = arith.maximumf %21, %22 : vector<16x128xf32>
    %cst_14 = arith.constant 0.000000e+00 : f32
    %24 = vector.broadcast %cst_14 : f32 to vector<16x128xf32>
    %25 = arith.cmpf ogt, %17, %24 : vector<16x128xf32>
    %cst_15 = arith.constant 0.000000e+00 : f32
    %26 = vector.broadcast %cst_15 : f32 to vector<16x128xf32>
    %27 = arith.select %25, %23, %26 : vector<16x128xi1>, vector<16x128xf32>
    %cst_16 = arith.constant 0.000000e+00 : f32
    %28 = vector.broadcast %cst_16 : f32 to vector<16x128xf32>
    %29 = arith.cmpf olt, %17, %28 : vector<16x128xf32>
    %cst_17 = arith.constant 0.000000e+00 : f32
    %30 = vector.broadcast %cst_17 : f32 to vector<16x128xf32>
    %31 = arith.select %29, %23, %30 : vector<16x128xi1>, vector<16x128xf32>
    %32 = arith.subf %27, %31 : vector<16x128xf32>
    %33 = arith.mulf %0, %12 : vector<16x128xf32>
    %cst_18 = arith.constant 1.000000e+00 : f32
    %34 = vector.broadcast %cst_18 : f32 to vector<16x128xf32>
    %35 = arith.subf %34, %12 : vector<16x128xf32>
    %36 = arith.mulf %35, %32 : vector<16x128xf32>
    %37 = arith.addf %33, %36 : vector<16x128xf32>
    %c0_19 = arith.constant 0 : index
    %c0_20 = arith.constant 0 : index
    %38 = vector.load %arg7[%c0_19, %c0_20] : memref<16x128xf32, #tpu.memory_space<vmem>>, vector<16x128xf32>
    tpu.vector_store %arg7[%c0_19, %c0_20], %37 {strides = array<i32>} : memref<16x128xf32, #tpu.memory_space<vmem>>, vector<16x128xf32>,
    return
  }
  func.func @transform_0(%arg0: i32) -> (i32, i32) {
    %c0_i32 = arith.constant 0 : i32
    %c0_i32_0 = arith.constant 0 : i32
    return %arg0, %c0_i32 : i32, i32
  }
  func.func @transform_1(%arg0: i32) -> (i32, i32) {
    %c0_i32 = arith.constant 0 : i32
    %c0_i32_0 = arith.constant 0 : i32
    return %arg0, %c0_i32 : i32, i32
  }
  func.func @transform_2(%arg0: i32) -> (i32, i32) {
    %c0_i32 = arith.constant 0 : i32
    %c0_i32_0 = arith.constant 0 : i32
    %c0_i32_1 = arith.constant 0 : i32
    return %c0_i32, %c0_i32_0 : i32, i32
  }
  func.func @transform_3(%arg0: i32) -> (i32, i32) {
    %c0_i32 = arith.constant 0 : i32
    %c0_i32_0 = arith.constant 0 : i32
    %c0_i32_1 = arith.constant 0 : i32
    return %c0_i32, %c0_i32_0 : i32, i32
  }
  func.func @transform_4(%arg0: i32) -> (i32, i32) {
    %c0_i32 = arith.constant 0 : i32
    %c0_i32_0 = arith.constant 0 : i32
    %c0_i32_1 = arith.constant 0 : i32
    return %c0_i32, %c0_i32_0 : i32, i32
  }
  func.func @transform_5(%arg0: i32) -> (i32, i32) {
    %c0_i32 = arith.constant 0 : i32
    %c0_i32_0 = arith.constant 0 : i32
    %c0_i32_1 = arith.constant 0 : i32
    return %c0_i32, %c0_i32_0 : i32, i32
  }
  func.func @transform_6(%arg0: i32) -> (i32, i32) {
    %c0_i32 = arith.constant 0 : i32
    %c0_i32_0 = arith.constant 0 : i32
    return %arg0, %c0_i32 : i32, i32
  }
}

</mosaic_0001>

<bundles_post_ra>
// kernel: tpu_custom_call.1
= control target key start
LH: loop header
LB: loop body
LE: loop exit
PB: predicated region body
PF: predicated region fallthrough
CT: control target
= control target key end

     0   :  { %11 = vsyncpa [#allocation3], 0  ;;  %s872_s0 = inlined_call_operand.hbm [shape: f32[16,160], index: 0, kind: input, shape index: {}]   ;;  %s873_s1 = inlined_call_operand.hbm [shape: f32[16,128], index: 1, kind: input, shape index: {}]   ;;  %s874_s2 = inlined_call_operand.hbm [shape: bf16[160,384], index: 2, kind: input, shape index: {}]   ;;  %s875_s3 = inlined_call_operand.hbm [shape: f32[128,128], index: 3, kind: input, shape index: {}]   ;;  %s876_s4 = inlined_call_operand.vmem [shape: f32[1,256], index: 4, kind: input, shape index: {}]   ;;  %s877_s5 = inlined_call_operand.vmem [shape: f32[1,128], index: 5, kind: input, shape index: {}]   ;;  %s878_s6 = inlined_call_operand.hbm [shape: f32[16,128], index: 6, kind: output, shape index: {}]  }
   0x1   :  { %12 = vsyncpa [#allocation6], 0 }
   0x2   :  { %13 = vsyncpa [#allocation9], 0  ;;  %s32_s23 = sshll.u32 %s873_s1, 4  ;;  %s33_s23 = int_to_ptr.hbm [resolvable:$true] %s32_s23 }
   0x3   :  { %14 = vsyncpa [#allocation4], 0  ;;  %s785_s24 = smov [#allocation5]   ;;  %s19_s28 = sshll.u32 %s872_s0, 4  ;;  %s20_s28 = int_to_ptr.hbm [resolvable:$true] %s19_s28 }
   0x4   :  { %s34_s25 = sshll.u32 %s785_s24, 4  ;;  %s786_s29 = smov 128   ;;  %s35_s25 = int_to_ptr.vmem [resolvable:$true] %s34_s25 }
   0x5   :  { %s787_s30 = smov 8   ;;  %s788_s7 = smov [#allocation2]  }
   0x6   :  { %40 = dma.hbm_to_vmem [thread:$0]  %s33_s23, 256, %s35_s25, [#allocation6], %s786_s29, %s786_s29, %s787_s30  }
   0x7   :  { %s21_s8 = sshll.u32 %s788_s7, 4  ;;  %s789_s1 = smov 256   ;;  %s22_s8 = int_to_ptr.vmem [resolvable:$true] %s21_s8 }
   0x8   :  { %s790_s9 = smov 16   ;;  %s45_s12 = sshll.u32 %s874_s2, 4  ;;  %s46_s12 = int_to_ptr.hbm [resolvable:$true] %s45_s12 }
   0x9   :  { %27 = dma.hbm_to_vmem [thread:$0]  %s20_s28, 512, %s22_s8, [#allocation3], %s789_s1, %s789_s1, %s790_s9  }
   0xa   :  { %s791_s13 = smov [#allocation7]   ;;  %s58_s16 = sshll.u32 %s875_s3, 4  ;;  %s59_s16 = int_to_ptr.hbm [resolvable:$true] %s58_s16 }
   0xb   :  { %s47_s0 = sshll.u32 %s791_s13, 4  ;;  %s792_s17 = smov 192   ;;  %s48_s0 = int_to_ptr.vmem [resolvable:$true] %s47_s0 }
   0xc   :  { %s793_s18 = smov 12   ;;  %s794_s19 = smov [#allocation8]  }
   0xd   :  { %53 = dma.hbm_to_vmem [thread:$0]  %s46_s12, 3840, %s48_s0, [#allocation6], %s792_s17, %s792_s17, %s793_s18  }
   0xe   :  { %s60_s20 = sshll.u32 %s794_s19, 4  ;;  %s61_s20 = int_to_ptr.vmem [resolvable:$true] %s60_s20 }
   0xf   :  { %66 = dma.hbm_to_vmem [thread:$0]  %s59_s16, 2048, %s61_s20, [#allocation9], %s786_s29, %s786_s29, %s787_s30  }
  0x10   :  { %777 = dma.done.wait [#allocation3], 512  }
  0x11   :  { %778 = vsyncadd [#allocation3], 4294966784 }
  0x12   :  { %779 = dma.done.wait [#allocation6], 4096  }
  0x13   :  { %780 = vsyncadd [#allocation6], 4294963200 }
  0x14   :  { %781 = dma.done.wait [#allocation9], 2048  }
  0x15   :  { %782 = vsyncadd [#allocation9], 4294965248  ;;  %v576_v0 = vld [vmem:[#allocation7 + $0xa8] sm:$0xf]  ;;  %v635_v1 = vld [vmem:[#allocation7 + $0xb0] sm:$0xf0] }
  0x16   :  { %v600_v2 = vld [vmem:[#allocation7 + $0xd8] sm:$0xf]  ;;  %v577_v3 = vor.u32 %v635_v1, %v576_v0  ;;  %v641_v4 = vld [vmem:[#allocation7 + $0xe0] sm:$0xf0]  ;;  %v608_v5 = vld [vmem:[#allocation7 + $0xe0] sm:$0xf] }
  0x17   :  { %v642_v6 = vld [vmem:[#allocation7 + $0xe8] sm:$0xf0]  ;;  %v601_v7 = vor.u32 %v641_v4, %v600_v2  ;;  %v564_v9 = vld [vmem:[#allocation7 + $0x90] sm:$0xf]  ;;  %v632_v10 = vld [vmem:[#allocation7 + $0x98] sm:$0xf0] }
  0x18   :  { %v609_v8 = vor.u32 %v642_v6, %v608_v5  ;;  %v588_v11 = vld [vmem:[#allocation7 + $0xc0] sm:$0xf]  ;;  %300 = vmatpush.bf16.msra.mxu0 %v577_v3  ;;  %v565_v12 = vor.u32 %v632_v10, %v564_v9  ;;  %v638_v13 = vld [vmem:[#allocation7 + $0xc8] sm:$0xf0]  ;;  %v578_v15 = vld [vmem:[#allocation7 + $0xb4] sm:$0xf0] }
  0x19   :  { %v634_v14 = vld [vmem:[#allocation7 + $0xac] sm:$0xf]  ;;  %320 = vmatpush.bf16.msra.mxu1 %v601_v7  ;;  %v589_v16 = vor.u32 %v638_v13, %v588_v11  ;;  %v596_v18 = vld [vmem:[#allocation7 + $0xc8] sm:$0xf]  ;;  %v639_v19 = vld [vmem:[#allocation7 + $0xd0] sm:$0xf0] }
  0x1a   :  { %376 = vmatpush.bf16.msra.mxu3 %v609_v8  ;;  %v581_v17 = vor.u32 %v634_v14, %v578_v15  ;;  %v584_v20 = vld [vmem:[#allocation7 + $0xb0] sm:$0xf]  ;;  %v597_v21 = vor.u32 %v639_v19, %v596_v18  ;;  %v636_v22 = vld [vmem:[#allocation7 + $0xb8] sm:$0xf0]  ;;  %v411_v23 = vld [vmem:[#allocation8 + $0x78] sm:$0xff]  ;;  %vm296_vm0 = vcmask 261120  }
  0x1b   :  { %v585_v24 = vor.u32 %v636_v22, %v584_v20  ;;  %v552_v25 = vld [vmem:[#allocation7 + $0x78] sm:$0xf]  ;;  %v629_v26 = vld [vmem:[#allocation7 + $0x80] sm:$0xf0]  ;;  %v631_v27 = vld [vmem:[#allocation7 + $0x94] sm:$0xf] }
  0x1c   :  { %328 = vmatpush.bf16.msra.mxu2 %v581_v17  ;;  %301 = vmatpush.bf16.msra.mxu0 %v565_v12  ;;  %v553_v28 = vor.u32 %v629_v26, %v552_v25  ;;  %v566_v29 = vld [vmem:[#allocation7 + $0x9c] sm:$0xf0]  ;;  %v572_v30 = vld [vmem:[#allocation7 + $0x98] sm:$0xf]  ;;  %v633_v31 = vld [vmem:[#allocation7 + $0xa0] sm:$0xf0] }
  0x1d   :  { %321 = vmatpush.bf16.msra.mxu1 %v589_v16  ;;  %v410_v32 = vld [vmem:[#allocation8 + $0x70] sm:$0xff]  ;;  %v569_v33 = vor.u32 %v631_v27, %v566_v29  ;;  %v409_v34 = vld [vmem:[#allocation8 + $0x68] sm:$0xff]  ;;  %v573_v36 = vor.u32 %v633_v31, %v572_v30  ;;  %v626_v37 = vld [vmem:[#allocation7 + $0x68] sm:$0xf0]  ;;  %s475_s27 = sshll.u32 %s878_s6, 4  ;;  %s476_s27 = int_to_ptr.hbm [resolvable:$true] %s475_s27 }
  0x1e   :  { %377 = vmatpush.bf16.msra.mxu3 %v597_v21  ;;  %v540_v35 = vld [vmem:[#allocation7 + $0x60] sm:$0xf]  ;;  %v628_v38 = vld [vmem:[#allocation7 + $0x7c] sm:$0xf]  ;;  %v554_v39 = vld [vmem:[#allocation7 + $0x84] sm:$0xf0] }
  0x1f   :  { %v557_v40 = vor.u32 %v628_v38, %v554_v39  ;;  %v91_v41 = vld [vmem:[#allocation2 + $0x8] sm:$0xff]  ;;  %v93_v42 = vld [vmem:[#allocation2 + $0x18] sm:$0xff]  ;;  %v560_v43 = vld [vmem:[#allocation7 + $0x80] sm:$0xf]  ;;  %v541_v45 = vor.u32 %v626_v37, %v540_v35 }
  0x20   :  { %329 = vmatpush.bf16.msra.mxu2 %v569_v33  ;;  %302 = vmatpush.bf16.msra.mxu0 %v553_v28  ;;  %v408_v44 = vld [vmem:[#allocation8 + $0x60] sm:$0xff]  ;;  %v849_v46 = vpack.c.bf16 %v93_v42, %v91_v41  ;;  %v630_v47 = vld [vmem:[#allocation7 + $0x88] sm:$0xf0]  ;;  %v528_v48 = vld [vmem:[#allocation7 + $0x48] sm:$0xf] }
  0x21   :  { %356 = vmatpush.bf16.msrb.mxu1 %v585_v24  ;;  %v623_v49 = vld [vmem:[#allocation7 + $0x50] sm:$0xf0]  ;;  %v625_v50 = vld [vmem:[#allocation7 + $0x64] sm:$0xf]  ;;  %v561_v51 = vor.u32 %v630_v47, %v560_v43  ;;  %v542_v52 = vld [vmem:[#allocation7 + $0x6c] sm:$0xf0] }
  0x22   :  { %412 = vmatpush.msrb.mxu3 %v411_v23  ;;  %v407_v53 = vld [vmem:[#allocation8 + $0x58] sm:$0xff]  ;;  %v545_v54 = vor.u32 %v625_v50, %v542_v52  ;;  %v627_v56 = vld [vmem:[#allocation7 + $0x70] sm:$0xf0]  ;;  %v529_v57 = vor.u32 %v623_v49, %v528_v48  ;;  %v530_v59 = vld [vmem:[#allocation7 + $0x54] sm:$0xf0]  ;;  %610 = vmatmul.msk.bf16.vlgmr.msra.gmra.mxu1 %vm296_vm0, %v849_v46 }
  0x23   :  { %612 = vmatmul.msk.bf16.vlgmr.msra.gmra.mxu3 %vm296_vm0, %v849_v46  ;;  %v548_v55 = vld [vmem:[#allocation7 + $0x68] sm:$0xf]  ;;  %v622_v58 = vld [vmem:[#allocation7 + $0x4c] sm:$0xf]  ;;  %v406_v60 = vld [vmem:[#allocation8 + $0x50] sm:$0xff] }
  0x24   :  { %413 = vmatpush.msrb.mxu3 %v410_v32  ;;  %330 = vmatpush.bf16.msra.mxu2 %v557_v40  ;;  %v516_v61 = vld [vmem:[#allocation7 + $0x30] sm:$0xf]  ;;  %v620_v62 = vld [vmem:[#allocation7 + $0x38] sm:$0xf0]  ;;  %v549_v63 = vor.u32 %v627_v56, %v548_v55  ;;  %v533_v1 = vor.u32 %v622_v58, %v530_v59  ;;  %v619_v5 = vld [vmem:[#allocation7 + $0x34] sm:$0xf] }
  0x25   :  { %357 = vmatpush.bf16.msrb.mxu1 %v573_v36  ;;  %303 = vmatpush.bf16.msra.mxu0 %v541_v45  ;;  %v405_v0 = vld [vmem:[#allocation8 + $0x48] sm:$0xff]  ;;  %v536_v2 = vld [vmem:[#allocation7 + $0x50] sm:$0xf]  ;;  %v517_v4 = vor.u32 %v620_v62, %v516_v61  ;;  %v518_v6 = vld [vmem:[#allocation7 + $0x3c] sm:$0xf0] }
  0x26   :  { %414 = vmatpush.msrb.mxu3 %v409_v34  ;;  %v624_v3 = vld [vmem:[#allocation7 + $0x58] sm:$0xf0]  ;;  %v404_v7 = vld [vmem:[#allocation8 + $0x40] sm:$0xff]  ;;  %v504_v8 = vld [vmem:[#allocation7 + $0x18] sm:$0xf]  ;;  %v521_v12 = vor.u32 %v619_v5, %v518_v6 }
  0x27   :  { %v617_v9 = vld [vmem:[#allocation7 + $0x20] sm:$0xf0]  ;;  %v537_v10 = vor.u32 %v624_v3, %v536_v2  ;;  %v403_v11 = vld [vmem:[#allocation8 + $0x38] sm:$0xff]  ;;  %v524_v13 = vld [vmem:[#allocation7 + $0x38] sm:$0xf] }
  0x28   :  { %415 = vmatpush.msrb.mxu3 %v408_v44  ;;  %331 = vmatpush.bf16.msra.mxu2 %v545_v54  ;;  %v621_v14 = vld [vmem:[#allocation7 + $0x40] sm:$0xf0]  ;;  %v505_v16 = vor.u32 %v617_v9, %v504_v8  ;;  %v616_v17 = vld [vmem:[#allocation7 + $0x1c] sm:$0xf]  ;;  %v506_v18 = vld [vmem:[#allocation7 + $0x24] sm:$0xf0] }
  0x29   :  { %358 = vmatpush.bf16.msrb.mxu1 %v561_v51  ;;  %304 = vmatpush.bf16.msra.mxu0 %v529_v57  ;;  %v402_v15 = vld [vmem:[#allocation8 + $0x30] sm:$0xff]  ;;  %v401_v19 = vld [vmem:[#allocation8 + $0x28] sm:$0xff]  ;;  %v614_v21 = vld [vmem:[#allocation7 + $0x8] sm:$0xf0]  ;;  %v525_v23 = vor.u32 %v621_v14, %v524_v13  ;;  %v509_v27 = vor.u32 %v616_v17, %v506_v18 }
  0x2a   :  { %416 = vmatpush.msrb.mxu3 %v407_v53  ;;  %v492_v20 = vld [vmem:[#allocation7] sm:$0xf]  ;;  %v618_v24 = vld [vmem:[#allocation7 + $0x28] sm:$0xf0]  ;;  %v640_v25 = vld [vmem:[#allocation7 + $0xdc] sm:$0xf] }
  0x2b   :  { %v512_v22 = vld [vmem:[#allocation7 + $0x20] sm:$0xf]  ;;  %v602_v26 = vld [vmem:[#allocation7 + $0xe4] sm:$0xf0]  ;;  %v90_v28 = vld [vmem:[#allocation2] sm:$0xff]  ;;  %v493_v31 = vor.u32 %v614_v21, %v492_v20 }
  0x2c   :  { %417 = vmatpush.msrb.mxu3 %v406_v60  ;;  %332 = vmatpush.bf16.msra.mxu2 %v533_v1  ;;  %v92_v29 = vld [vmem:[#allocation2 + $0x10] sm:$0xff]  ;;  %v494_v32 = vld [vmem:[#allocation7 + $0xc] sm:$0xf0]  ;;  %v605_v34 = vor.u32 %v640_v25, %v602_v26  ;;  %v513_v35 = vor.u32 %v618_v24, %v512_v22  ;;  %v399_v38 = vld [vmem:[#allocation8 + $0x18] sm:$0xff] }
  0x2d   :  { %359 = vmatpush.bf16.msrb.mxu1 %v549_v63  ;;  %305 = vmatpush.bf16.msra.mxu0 %v517_v4  ;;  %v613_v30 = vld [vmem:[#allocation7 + $0x4] sm:$0xf]  ;;  %v400_v33 = vld [vmem:[#allocation8 + $0x20] sm:$0xff]  ;;  %v94_v39 = vpack.c.bf16 %v92_v29, %v90_v28  ;;  %v500_v41 = vld [vmem:[#allocation7 + $0x8] sm:$0xf] }
  0x2e   :  { %418 = vmatpush.msrb.mxu3 %v405_v0  ;;  %v637_v36 = vld [vmem:[#allocation7 + $0xc4] sm:$0xf]  ;;  %v590_v37 = vld [vmem:[#allocation7 + $0xcc] sm:$0xf0]  ;;  %v497_v40 = vor.u32 %v613_v30, %v494_v32  ;;  %v615_v42 = vld [vmem:[#allocation7 + $0x10] sm:$0xf0] }
  0x2f   :  { %v398_v43 = vld [vmem:[#allocation8 + $0x10] sm:$0xff]  ;;  %v593_v44 = vor.u32 %v637_v36, %v590_v37  ;;  %v501_v45 = vor.u32 %v615_v42, %v500_v41  ;;  %v397_v47 = vld [vmem:[#allocation8 + $0x8] sm:$0xff]  ;;  %v396_v48 = vld [vmem:[#allocation8] sm:$0xff] }
  0x30   :  { %419 = vmatpush.msrb.mxu3 %v404_v7  ;;  %333 = vmatpush.bf16.msra.mxu2 %v521_v12  ;;  %v88_v49 = vld [vmem:[#allocation5] sm:$0xff]  ;;  %v89_v50 = vld [vmem:[#allocation5 + $0x8] sm:$0xff] }
  0x31   :  { %360 = vmatpush.bf16.msrb.mxu1 %v537_v10  ;;  %306 = vmatpush.bf16.msra.mxu0 %v505_v16  ;;  %v654_v57 = vld [vmem:[%s876_s4] ss:$0 sm:$0xff]  ;;  %v656_v3 = vld [vmem:[%s876_s4 + $0x1] ss:$0 sm:$0xff]  ;;  %s795_s4 = smov [#allocation10]  }
  0x32   :  { %420 = vmatpush.msrb.mxu3 %v403_v11 }
  0x34   :  { %421 = vmatpush.msrb.mxu3 %v402_v15  ;;  %334 = vmatpush.bf16.msra.mxu2 %v509_v27 }
  0x35   :  { %361 = vmatpush.bf16.msrb.mxu1 %v525_v23  ;;  %307 = vmatpush.bf16.msra.mxu0 %v493_v31 }
  0x36   :  { %422 = vmatpush.msrb.mxu3 %v401_v19 }
  0x38   :  { %423 = vmatpush.msrb.mxu3 %v400_v33  ;;  %308 = vmatmul.bf16.vlgmr.msra.gmra.mxu0 %v94_v39 }
  0x39   :  { %348 = vmatpush.bf16.msrb.mxu0 %v605_v34  ;;  %362 = vmatpush.bf16.msrb.mxu1 %v513_v35 }
  0x3a   :  { %424 = vmatpush.msrb.mxu3 %v399_v38  ;;  %335 = vmatpush.bf16.msra.mxu2 %v497_v40 }
  0x3c   :  { %425 = vmatpush.msrb.mxu3 %v398_v43 }
  0x3d   :  { %349 = vmatpush.bf16.msrb.mxu0 %v593_v44  ;;  %363 = vmatpush.bf16.msrb.mxu1 %v501_v45 }
  0x3e   :  { %426 = vmatpush.msrb.mxu3 %v397_v47  ;;  %336 = vmatmul.bf16.vlgmr.msra.gmra.mxu2 %v94_v39 }
  0x40   :  { %427 = vmatpush.msrb.mxu3 %v396_v48  ;;  %364 = vmatmul.bf16.vlgmr.msrb.gmra.mxu1 %v94_v39 }
  0x41   :  { %428 = vmatmul.f32.vlgmr.msrb.gmra.mxu3 %v88_v49 }
  0x48   :  { %611 = vmatmul.msk.bf16.vlgmr.msrb.gmra.mxu0 %vm296_vm0, %v849_v46  ;;  %v655_v46 = vld [vmem:[%s877_s5] ss:$0 sm:$0xff]  ;;  %s473_s5 = sshll.u32 %s795_s4, 4  ;;  %s474_s5 = int_to_ptr.vmem [resolvable:$true] %s473_s5 }
  0x49   :  { %431 = vmatmul.f32.gmra.mxu3 %v89_v50 }
  0x9f   :  { %v323_v51 = vpop.f32.mrf.mxu1 }
  0xa6   :  { %v379_v52 = vpop.f32.mrf.mxu3 }
  0xa7   :  { %v325_v53 = vpop.f32.mrf.mxu1 }
  0xae   :  { %v381_v55 = vpop.f32.mrf.mxu3 }
  0xb5   :  { %v309_v54 = vpop.f32.mrf.mxu0 }
  0xb6   :  { %v324_v56 = vadd.f32 %v323_v51, %v309_v54 }
  0xb8   :  { %v388_v60 = vadd.f32 %v654_v57, %v324_v56 }
  0xbd   :  { %v365_v58 = vpop.f32.mrf.mxu1  ;;  %v311_v59 = vpop.f32.mrf.mxu0 }
  0xbe   :  { %v380_v62 = vadd.f32 %v379_v52, %v365_v58  ;;  %v326_v1 = vadd.f32 %v325_v53, %v311_v59 }
  0xc0   :  { %v389_v10 = vadd.f32 %v654_v57, %v326_v1 }
  0xc1   :  { %v337_v0 = vpop.f32.mrf.mxu2 }
  0xc4   :  { %v429_v61 = vpop.f32.mrf.mxu3 }
  0xc5   :  { %v435_v63 = vmul.f32 %v429_v61, %v388_v60  ;;  %v351_v4 = vpop.f32.mrf.mxu0  ;;  %v367_v7 = vpop.f32.mrf.mxu1 }
  0xc6   :  { %v352_v6 = vadd.f32 %v351_v4, %v337_v0  ;;  %v382_v13 = vadd.f32 %v381_v55, %v367_v7 }
  0xc7   :  { %v437_v2 = vadd.f32 %v435_v63, %v380_v62 }
  0xc8   :  { %v394_v9 = vadd.f32 %v656_v3, %v352_v6 }
  0xc9   :  { %v439_v5 = vand.u32 2147483647, %v437_v2  ;;  %vm449_vm1 = vcmp.gt.f32.partialorder %v437_v2, 0.0  ;;  %vm453_vm2 = vcmp.lt.f32.partialorder %v437_v2, 0.0  ;;  %v339_v20 = vpop.f32.mrf.mxu2 }
  0xca   :  { %v461_v15 = vsub.f32 1.0, %v394_v9  ;;  %v459_v24 = vmul.f32 %v394_v9, %v88_v49 }
  0xcb   :  { %v445_v8 = vadd.f32 %v655_v46, %v439_v5 }
  0xcc   :  { %v432_v11 = vpop.f32.mrf.mxu3 }
  0xcd   :  { %v447_v12 = vmax.f32 %v445_v8, 0.0  ;;  %v436_v14 = vmul.f32 %v432_v11, %v389_v10  ;;  %v353_v21 = vpop.f32.mrf.mxu0 }
  0xce   :  { %v354_v23 = vadd.f32 %v353_v21, %v339_v20 }
  0xcf   :  { %v451_v16 = vsel %vm449_vm1, %v447_v12, 0.0  ;;  %v455_v17 = vsel %vm453_vm2, %v447_v12, 0.0  ;;  %v438_v18 = vadd.f32 %v436_v14, %v382_v13 }
  0xd0   :  { %v457_v19 = vsub.f32 %v451_v16, %v455_v17  ;;  %v395_v28 = vadd.f32 %v656_v3, %v354_v23 }
  0xd1   :  { %v440_v22 = vand.u32 2147483647, %v438_v18  ;;  %vm450_vm3 = vcmp.gt.f32.partialorder %v438_v18, 0.0  ;;  %vm454_vm4 = vcmp.lt.f32.partialorder %v438_v18, 0.0 }
  0xd2   :  { %v463_v25 = vmul.f32 %v461_v15, %v457_v19  ;;  %v462_v33 = vsub.f32 1.0, %v395_v28  ;;  %v460_v34 = vmul.f32 %v395_v28, %v89_v50 }
  0xd3   :  { %v446_v26 = vadd.f32 %v655_v46, %v440_v22 }
  0xd4   :  { %v465_v27 = vadd.f32 %v463_v25, %v459_v24 }
  0xd5   :  { %v448_v29 = vmax.f32 %v446_v26, 0.0 }
  0xd6   :  { %467 = vst [vmem:[#allocation10] sm:$0xff] %v465_v27 }
  0xd7   :  { %v452_v30 = vsel %vm450_vm3, %v448_v29, 0.0  ;;  %v456_v31 = vsel %vm454_vm4, %v448_v29, 0.0 }
  0xd8   :  { %v458_v32 = vsub.f32 %v452_v30, %v456_v31 }
  0xda   :  { %v464_v35 = vmul.f32 %v462_v33, %v458_v32 }
  0xdc   :  { %v466_v36 = vadd.f32 %v464_v35, %v460_v34 }
  0xde   :  { %468 = vst [vmem:[#allocation10 + $0x8] sm:$0xff] %v466_v36 }
  0xdf   :  { %481 = dma.vmem_to_hbm [thread:$0]  %s474_s5, 256, %s476_s27, [#allocation4], %s786_s29, %s786_s29, %s787_s30  }
  0xe0   :  { %783 = dma.done.wait [#allocation4], 256  }
  0xe1   :  { %784 = vsyncadd [#allocation4], 4294967040 }
  0xe2   :  { %486 = vsyncpa [#allocation3], 1 }
  0xe3   :  { %487 = vsyncpa [#allocation6], 1 }
  0xe4   :  { %488 = vsyncpa [#allocation9], 1 }
  0xe5   :  { %489 = vsyncpa [#allocation4], 1 }

</bundles_post_ra>
